<compile_context>
chip_gen: v7x
topology: tpu7x:2x2x1
jax: 0.10.0
libtpu: 0.0.40
codegen_flags: <defaults>
</compile_context>

<pallas_src>
import jax
import jax.numpy as jnp
from jax.experimental import pallas as pl
from jax.experimental.pallas import tpu as pltpu

_H1 = 512
_H2 = 256
_VMEM_BUDGET = 44 << 20  # block-footprint budget; safe under v7x's 64 MiB physical VMEM


def _round_up(x, m):
    return ((x + m - 1) // m) * m


def _leaky_relu(x, slope=0.2):
    return jnp.where(x > 0, x, slope * x)


def discriminator_kernel(x_ref, w1_ref, b1_ref, w2_ref, b2_ref, w3_ref, b3_ref,
                         out_ref):
    # Entire MLP hot path runs in VMEM per batch tile:
    # two MXU matmuls + VPU bias-add / leaky-relu, final 256->1 layer on VPU+XLU.
    x = x_ref[...]

    h1 = jnp.dot(x, w1_ref[...], preferred_element_type=jnp.float32) + b1_ref[...]
    h1 = _leaky_relu(h1)

    h2 = jnp.dot(h1, w2_ref[...], preferred_element_type=jnp.float32) + b2_ref[...]
    h2 = _leaky_relu(h2)

    # Final layer: w3 is passed as a (1, 256) row -> broadcast multiply + lane
    # reduction. Avoids an N=1 MXU pass and keeps the output a true (tile_b, 1)
    # column (dense, tiny HBM writeback).
    out = jnp.sum(h2 * w3_ref[...], axis=-1, keepdims=True) + b3_ref[...]
    out_ref[...] = out.astype(out_ref.dtype)


def _per_row_bytes(in_dim):
    f32 = 4
    # double-buffered x row + h1 + h2 intermediates + double-buffered out row
    return (2 * in_dim + _H1 + _H2 + 2) * f32


def _weight_bytes(in_dim):
    f32 = 4
    w = in_dim * _H1 + _H1 + _H1 * _H2 + _H2 + _H2 + 1
    return 2 * w * f32  # account for Pallas double-buffering of every input


def _choose_tile_b(B, in_dim):
    """Pick a batch tile: big (fewer grid steps, dense DMAs), VMEM-safe on v7x,
    and an even number of steps when B is large enough (feeds both v7x TCs)."""
    avail = _VMEM_BUDGET - _weight_bytes(in_dim)
    if avail > 0:
        max_tile = max(256, (avail // _per_row_bytes(in_dim)) // 256 * 256)
    else:
        max_tile = 256  # huge in_dim: weights dominate; keep the row tile minimal

    B8 = _round_up(B, 8)
    if B8 <= 256:
        return min(B8, max_tile)

    # At least 2 steps (v7x dual-TC), target ~2048 rows/step, even step count.
    n_steps = max(2, pl.cdiv(B8, 2048))
    if n_steps % 2:
        n_steps += 1
    tile = _round_up(pl.cdiv(B8, n_steps), 256)
    return max(256, min(tile, 2048, max_tile))


def _vmem_limit_bytes(tile_b, in_dim):
    total = _weight_bytes(in_dim) + tile_b * _per_row_bytes(in_dim) + (4 << 20)
    return int(min(max(total, 16 << 20), 56 << 20))


def discriminator_forward(x, params):
    """x: (B, in_dim) float32; params: (w1, b1, w2, b2, w3, b3)."""
    w1, b1, w2, b2, w3, b3 = params
    B, in_dim = x.shape

    # (256, 1) -> (1, 256) row for the in-kernel broadcast multiply (free reshape).
    w3_row = jnp.reshape(w3, (1, _H2))
    b3_s = jnp.reshape(b3, (1, 1))

    tile_b = _choose_tile_b(B, in_dim)
    grid = (pl.cdiv(B, tile_b),)

    flops = 2 * B * (in_dim * _H1 + _H1 * _H2 + _H2)
    bytes_accessed = 4 * (B * in_dim + B            # x in, out column
                          + in_dim * _H1 + _H1      # w1, b1
                          + _H1 * _H2 + _H2         # w2, b2
                          + _H2 + 1)                # w3, b3

    out = pl.pallas_call(
        discriminator_kernel,
        out_shape=jax.ShapeDtypeStruct((B, 1), jnp.float32),
        grid=grid,
        in_specs=[
            pl.BlockSpec((tile_b, in_dim), lambda i: (i, 0)),  # x: tiled on batch
            pl.BlockSpec((in_dim, _H1), lambda i: (0, 0)),     # w1: VMEM-resident
            pl.BlockSpec((1, _H1), lambda i: (0, 0)),          # b1
            pl.BlockSpec((_H1, _H2), lambda i: (0, 0)),        # w2
            pl.BlockSpec((1, _H2), lambda i: (0, 0)),          # b2
            pl.BlockSpec((1, _H2), lambda i: (0, 0)),          # w3 (row form)
            pl.BlockSpec((1, 1), lambda i: (0, 0)),            # b3
        ],
        out_specs=pl.BlockSpec((tile_b, 1), lambda i: (i, 0)),
        compiler_params=pltpu.CompilerParams(
            dimension_semantics=("parallel",),
            vmem_limit_bytes=_vmem_limit_bytes(tile_b, in_dim),
        ),
        cost_estimate=pl.CostEstimate(
            flops=flops, transcendentals=0, bytes_accessed=bytes_accessed),
    )(x, w1, b1, w2, b2, w3_row, b3_s)

    return out


def init_params(key, in_dim):
    """Deterministic init mimicking PyTorch nn.Linear default (uniform +-1/sqrt(fan_in))."""
    dims = [(in_dim, _H1), (_H1, _H2), (_H2, 1)]
    params = []
    for i, (fan_in, fan_out) in enumerate(dims):
        kw, kb = jax.random.split(jax.random.fold_in(key, i))
        bound = 1.0 / jnp.sqrt(jnp.float32(fan_in))
        w = jax.random.uniform(kw, (fan_in, fan_out), jnp.float32, -bound, bound)
        b = jax.random.uniform(kb, (1, fan_out), jnp.float32, -bound, bound)
        params.extend([w, b])
    return tuple(params)


def reference_forward(x, params):
    w1, b1, w2, b2, w3, b3 = params
    h1 = jax.nn.leaky_relu(x @ w1 + b1, negative_slope=0.2)
    h2 = jax.nn.leaky_relu(h1 @ w2 + b2, negative_slope=0.2)
    return h2 @ w3 + b3


if __name__ == "__main__":
    key = jax.random.PRNGKey(0)

    # Small shapes consistent with Discriminator(in_dim).
    B, in_dim = 8, 32
    k_x, k_p, k_x2 = jax.random.split(key, 3)
    x = jax.random.normal(k_x, (B, in_dim), jnp.float32)
    params = init_params(k_p, in_dim)

    out = jax.block_until_ready(discriminator_forward(x, params))
    ref = reference_forward(x, params)
    assert out.shape == (B, 1), out.shape
    assert jnp.allclose(out, ref, atol=1e-4, rtol=1e-4), "mismatch vs reference (small)"

    # Larger, non-divisible batch exercises the multi-step grid + partial last block.
    B2 = 1024 + 40
    x2 = jax.random.normal(k_x2, (B2, in_dim), jnp.float32)
    out2 = jax.block_until_ready(discriminator_forward(x2, params))
    ref2 = reference_forward(x2, params)
    assert out2.shape == (B2, 1), out2.shape
    assert jnp.allclose(out2, ref2, atol=1e-4, rtol=1e-4), "mismatch vs reference (tiled)"

    print("KERNEL_OK")
</pallas_src>

<mosaic_0001>
module attributes {stable_mosaic.version = 11 : i64} {
  func.func @discriminator_kernel(%arg0: i32, %arg1: memref<8x32xf32, #tpu.memory_space<vmem>>, %arg2: memref<32x512xf32, #tpu.memory_space<vmem>>, %arg3: memref<1x512xf32, #tpu.memory_space<vmem>>, %arg4: memref<512x256xf32, #tpu.memory_space<vmem>>, %arg5: memref<1x256xf32, #tpu.memory_space<vmem>>, %arg6: memref<1x256xf32, #tpu.memory_space<vmem>>, %arg7: memref<1x1xf32, #tpu.memory_space<vmem>>, %arg8: memref<8x1xf32, #tpu.memory_space<vmem>>) attributes {dimension_semantics = [#tpu.dimension_semantics<parallel>], iteration_bounds = array<i64: 1>, scalar_prefetch = 0 : i64, scratch_operands = 0 : i64, tpu.core_type = #tpu.core_type<tc>, window_params = [{transform_indices = @transform_0, window_bounds = array<i64: 8, 32>}, {pipeline_mode = #tpu.pipeline_mode<synchronous>, transform_indices = @transform_1, window_bounds = array<i64: 32, 512>}, {pipeline_mode = #tpu.pipeline_mode<synchronous>, transform_indices = @transform_2, window_bounds = array<i64: 1, 512>}, {pipeline_mode = #tpu.pipeline_mode<synchronous>, transform_indices = @transform_3, window_bounds = array<i64: 512, 256>}, {pipeline_mode = #tpu.pipeline_mode<synchronous>, transform_indices = @transform_4, window_bounds = array<i64: 1, 256>}, {pipeline_mode = #tpu.pipeline_mode<synchronous>, transform_indices = @transform_5, window_bounds = array<i64: 1, 256>}, {pipeline_mode = #tpu.pipeline_mode<synchronous>, transform_indices = @transform_6, window_bounds = array<i64: 1, 1>}, {transform_indices = @transform_7, window_bounds = array<i64: 8, 1>}]} {
    %c0 = arith.constant 0 : index
    %c0_0 = arith.constant 0 : index
    %0 = vector.load %arg1[%c0, %c0_0] : memref<8x32xf32, #tpu.memory_space<vmem>>, vector<8x32xf32>
    %c0_1 = arith.constant 0 : index
    %c0_2 = arith.constant 0 : index
    %1 = vector.load %arg2[%c0_1, %c0_2] : memref<32x512xf32, #tpu.memory_space<vmem>>, vector<32x512xf32>
    %cst = arith.constant dense<0.000000e+00> : vector<8x512xf32>
    %2 = tpu.matmul %0, %1, %cst {dimension_numbers = #tpu.dot_dimension_numbers<[1], [0], [0], [1], [0, 0, 1, 1], [], []>} : vector<8x32xf32>, vector<32x512xf32>, vector<8x512xf32> -> vector<8x512xf32>
    %c0_3 = arith.constant 0 : index
    %c0_4 = arith.constant 0 : index
    %3 = vector.load %arg3[%c0_3, %c0_4] : memref<1x512xf32, #tpu.memory_space<vmem>>, vector<1x512xf32>
    %4 = vector.broadcast %3 : vector<1x512xf32> to vector<8x512xf32>
    %5 = arith.addf %2, %4 : vector<8x512xf32>
    %cst_5 = arith.constant 0.000000e+00 : f32
    %6 = vector.broadcast %cst_5 : f32 to vector<8x512xf32>
    %7 = arith.cmpf ogt, %5, %6 : vector<8x512xf32>
    %cst_6 = arith.constant 2.000000e-01 : f32
    %8 = vector.broadcast %cst_6 : f32 to vector<8x512xf32>
    %9 = arith.mulf %8, %5 : vector<8x512xf32>
    %10 = arith.select %7, %5, %9 : vector<8x512xi1>, vector<8x512xf32>
    %c0_7 = arith.constant 0 : index
    %c0_8 = arith.constant 0 : index
    %11 = vector.load %arg4[%c0_7, %c0_8] : memref<512x256xf32, #tpu.memory_space<vmem>>, vector<512x256xf32>
    %cst_9 = arith.constant dense<0.000000e+00> : vector<8x256xf32>
    %12 = tpu.matmul %10, %11, %cst_9 {dimension_numbers = #tpu.dot_dimension_numbers<[1], [0], [0], [1], [0, 0, 1, 1], [], []>} : vector<8x512xf32>, vector<512x256xf32>, vector<8x256xf32> -> vector<8x256xf32>
    %c0_10 = arith.constant 0 : index
    %c0_11 = arith.constant 0 : index
    %13 = vector.load %arg5[%c0_10, %c0_11] : memref<1x256xf32, #tpu.memory_space<vmem>>, vector<1x256xf32>
    %14 = vector.broadcast %13 : vector<1x256xf32> to vector<8x256xf32>
    %15 = arith.addf %12, %14 : vector<8x256xf32>
    %cst_12 = arith.constant 0.000000e+00 : f32
    %16 = vector.broadcast %cst_12 : f32 to vector<8x256xf32>
    %17 = arith.cmpf ogt, %15, %16 : vector<8x256xf32>
    %cst_13 = arith.constant 2.000000e-01 : f32
    %18 = vector.broadcast %cst_13 : f32 to vector<8x256xf32>
    %19 = arith.mulf %18, %15 : vector<8x256xf32>
    %20 = arith.select %17, %15, %19 : vector<8x256xi1>, vector<8x256xf32>
    %c0_14 = arith.constant 0 : index
    %c0_15 = arith.constant 0 : index
    %21 = vector.load %arg6[%c0_14, %c0_15] : memref<1x256xf32, #tpu.memory_space<vmem>>, vector<1x256xf32>
    %22 = vector.broadcast %21 : vector<1x256xf32> to vector<8x256xf32>
    %23 = arith.mulf %20, %22 : vector<8x256xf32>
    %cst_16 = arith.constant dense<0.000000e+00> : vector<8xf32>
    %24 = vector.multi_reduction <add>, %23, %cst_16 [1] : vector<8x256xf32> to vector<8xf32>
    %25 = vector.shape_cast %24 : vector<8xf32> to vector<8x1xf32>
    %c0_17 = arith.constant 0 : index
    %c0_18 = arith.constant 0 : index
    %26 = vector.load %arg7[%c0_17, %c0_18] : memref<1x1xf32, #tpu.memory_space<vmem>>, vector<1x1xf32>
    %27 = vector.broadcast %26 : vector<1x1xf32> to vector<8x1xf32>
    %28 = arith.addf %25, %27 : vector<8x1xf32>
    %c0_19 = arith.constant 0 : index
    %c0_20 = arith.constant 0 : index
    %29 = vector.load %arg8[%c0_19, %c0_20] : memref<8x1xf32, #tpu.memory_space<vmem>>, vector<8x1xf32>
    tpu.vector_store %arg8[%c0_19, %c0_20], %28 {strides = array<i32>} : memref<8x1xf32, #tpu.memory_space<vmem>>, vector<8x1xf32>,
    return
  }
  func.func @transform_0(%arg0: i32) -> (i32, i32) {
    %c0_i32 = arith.constant 0 : i32
    %c0_i32_0 = arith.constant 0 : i32
    return %arg0, %c0_i32 : i32, i32
  }
  func.func @transform_1(%arg0: i32) -> (i32, i32) {
    %c0_i32 = arith.constant 0 : i32
    %c0_i32_0 = arith.constant 0 : i32
    %c0_i32_1 = arith.constant 0 : i32
    return %c0_i32, %c0_i32_0 : i32, i32
  }
  func.func @transform_2(%arg0: i32) -> (i32, i32) {
    %c0_i32 = arith.constant 0 : i32
    %c0_i32_0 = arith.constant 0 : i32
    %c0_i32_1 = arith.constant 0 : i32
    return %c0_i32, %c0_i32_0 : i32, i32
  }
  func.func @transform_3(%arg0: i32) -> (i32, i32) {
    %c0_i32 = arith.constant 0 : i32
    %c0_i32_0 = arith.constant 0 : i32
    %c0_i32_1 = arith.constant 0 : i32
    return %c0_i32, %c0_i32_0 : i32, i32
  }
  func.func @transform_4(%arg0: i32) -> (i32, i32) {
    %c0_i32 = arith.constant 0 : i32
    %c0_i32_0 = arith.constant 0 : i32
    %c0_i32_1 = arith.constant 0 : i32
    return %c0_i32, %c0_i32_0 : i32, i32
  }
  func.func @transform_5(%arg0: i32) -> (i32, i32) {
    %c0_i32 = arith.constant 0 : i32
    %c0_i32_0 = arith.constant 0 : i32
    %c0_i32_1 = arith.constant 0 : i32
    return %c0_i32, %c0_i32_0 : i32, i32
  }
  func.func @transform_6(%arg0: i32) -> (i32, i32) {
    %c0_i32 = arith.constant 0 : i32
    %c0_i32_0 = arith.constant 0 : i32
    %c0_i32_1 = arith.constant 0 : i32
    return %c0_i32, %c0_i32_0 : i32, i32
  }
  func.func @transform_7(%arg0: i32) -> (i32, i32) {
    %c0_i32 = arith.constant 0 : i32
    %c0_i32_0 = arith.constant 0 : i32
    return %arg0, %c0_i32 : i32, i32
  }
}

</mosaic_0001>

<bundles_post_ra>
// kernel: tpu_custom_call.1
= control target key start
LH: loop header
LB: loop body
LE: loop exit
PB: predicated region body
PF: predicated region fallthrough
CT: control target
= control target key end

     0   :  { %s915_s0 = inlined_call_operand.hbm [shape: f32[8,32], index: 0, kind: input, shape index: {}]   ;;  %s916_s1 = inlined_call_operand.hbm [shape: f32[32,512], index: 1, kind: input, shape index: {}]   ;;  %s917_s2 = inlined_call_operand.vmem [shape: f32[1,512], index: 2, kind: input, shape index: {}]   ;;  %s918_s3 = inlined_call_operand.hbm [shape: f32[512,256], index: 3, kind: input, shape index: {}]   ;;  %s919_s4 = inlined_call_operand.vmem [shape: f32[1,256], index: 4, kind: input, shape index: {}]   ;;  %s920_s5 = inlined_call_operand.vmem [shape: f32[1,256], index: 5, kind: input, shape index: {}]   ;;  %s921_s6 = inlined_call_operand.<no memory space> [shape: f32[1,1], index: 6, kind: input, shape index: {}]   ;;  %s922_s7 = inlined_call_operand.vmem [shape: f32[8,1], index: 7, kind: output, shape index: {}]  }
   0x1   :  { %v12_v0 = vstv %s921_s6 }
   0x2   :  { %13 = vst [vmem:[#allocation2] sm:$0x1] %v12_v0 }
   0x3   :  { %14 = vsyncpa [#allocation4], 0 }
   0x4   :  { %15 = vsyncpa [#allocation6], 0  ;;  %s814_s26 = smov [#allocation5]   ;;  %s744_s30 = scalar_lea.hbm %s916_s1, 2048 }
   0x5   :  { %s31_s27 = sshll.u32 %s814_s26, 4  ;;  %p745_p0 = scmp.ne.s32.totalorder %s916_s1, %s744_s30  ;;  %s32_s27 = int_to_ptr.vmem [resolvable:$true] %s31_s27 }
   0x6   :  { %p748_p1 = scmp.lt.u32.totalorder %s744_s30, %s916_s1 }
   0x8   :  { %p750_p2 = pnand %p748_p1, %p745_p0 }
   0xa   :  { %753 = shalt.err (!%p750_p2)
}
   0xb   :  { %s754_s6 = scalar_lea.vmem %s32_s27, 2048  ;;  %p759_p4 = scmp.lt.s32.totalorder %s32_s27, %s32_s27 }
   0xc   :  { %p755_p3 = scmp.ne.s32.totalorder %s32_s27, %s754_s6  ;;  %p760_p5 = scmp.lt.s32.totalorder %s754_s6, %s754_s6 }
   0xe   :  { %p761_p6 = por %p760_p5, %p759_p4 }
  0x10   :  { %p762_p7 = pnand %p761_p6, %p755_p3 }
  0x12   :  { %765 = shalt.err (!%p762_p7)
}
  0x13   :  { %s815_s12 = smov 512   ;;  %s816_s13 = smov 32  }
  0x14   :  { %37 = dma.hbm_to_vmem [thread:$0]  %s916_s1, 2048, %s32_s27, [#allocation6], %s815_s12, %s815_s12, %s816_s13  }
  0x15   :  { %s817_s16 = smov [#allocation3]   ;;  %s818_s18 = smov [#allocation7]  }
  0x16   :  { %s22_s17 = sshll.u32 %s817_s16, 4  ;;  %s45_s19 = sshll.u32 %s818_s18, 4  ;;  %s23_s17 = int_to_ptr.vmem [resolvable:$true] %s22_s17  ;;  %s46_s19 = int_to_ptr.vmem [resolvable:$true] %s45_s19 }
  0x17   :  { %s766_s22 = scalar_lea.hbm %s915_s0, 128 }
  0x18   :  { %p767_p8 = scmp.ne.s32.totalorder %s915_s0, %s766_s22  ;;  %p770_p9 = scmp.lt.u32.totalorder %s766_s22, %s915_s0 }
  0x1a   :  { %p772_p10 = pnand %p770_p9, %p767_p8 }
  0x1c   :  { %775 = shalt.err (!%p772_p10)
}
  0x1d   :  { %s776_s1 = scalar_lea.vmem %s23_s17, 128  ;;  %p781_p12 = scmp.lt.s32.totalorder %s23_s17, %s23_s17 }
  0x1e   :  { %p777_p11 = scmp.ne.s32.totalorder %s23_s17, %s776_s1  ;;  %p782_p13 = scmp.lt.s32.totalorder %s776_s1, %s776_s1 }
  0x20   :  { %p783_p0 = por %p782_p13, %p781_p12 }
  0x22   :  { %p784_p1 = pnand %p783_p0, %p777_p11 }
  0x24   :  { %787 = shalt.err (!%p784_p1)
}
  0x25   :  { %25 = dma.hbm_to_vmem [thread:$0]  %s915_s0, 128, %s23_s17, [#allocation4]  }
  0x26   :  { %s788_s8 = scalar_lea.hbm %s918_s3, 16384 }
  0x27   :  { %p789_p2 = scmp.ne.s32.totalorder %s918_s3, %s788_s8  ;;  %p792_p3 = scmp.lt.u32.totalorder %s788_s8, %s918_s3 }
  0x29   :  { %p794_p4 = pnand %p792_p3, %p789_p2 }
  0x2b   :  { %797 = shalt.err (!%p794_p4)
}
  0x2c   :  { %s798_s12 = scalar_lea.vmem %s46_s19, 16384  ;;  %p803_p6 = scmp.lt.s32.totalorder %s46_s19, %s46_s19 }
  0x2d   :  { %p799_p5 = scmp.ne.s32.totalorder %s46_s19, %s798_s12  ;;  %p804_p7 = scmp.lt.s32.totalorder %s798_s12, %s798_s12 }
  0x2f   :  { %p805_p8 = por %p804_p7, %p803_p6 }
  0x31   :  { %p806_p9 = pnand %p805_p8, %p799_p5 }
  0x33   :  { %809 = shalt.err (!%p806_p9)
}
  0x34   :  { %s819_s0 = smov 256   ;;  %s820_s13 = smov 16  }
  0x35   :  { %51 = dma.hbm_to_vmem [thread:$0]  %s918_s3, 16384, %s46_s19, [#allocation6], %s819_s0, %s819_s0, %s820_s13  }
  0x36   :  { %810 = dma.done.wait [#allocation4], 128  }
  0x37   :  { %811 = vsyncadd [#allocation4], 4294967168 }
  0x38   :  { %812 = dma.done.wait [#allocation6], 18432  }
  0x39   :  { %813 = vsyncadd [#allocation6], 4294948864  ;;  %v821_v1 = vmov 0.0   ;;  %v69_v2 = vld [vmem:[#allocation5 + $0x8] sm:$0xff]  ;;  %v71_v4 = vld [vmem:[#allocation5 + $0x18] sm:$0xff]  ;;  %vm106_vm0 = vcmask 261120  }
  0x3a   :  { %174 = vmatprep.mubr.f32.mxu0 %v821_v1  ;;  %245 = vmatprep.mubr.f32.mxu1 %v821_v1  ;;  %v73_v3 = vld [vmem:[#allocation5 + $0x28] sm:$0xff]  ;;  %v75_v6 = vld [vmem:[#allocation5 + $0x38] sm:$0xff]  ;;  %v68_v7 = vld [vmem:[#allocation5] sm:$0xff]  ;;  %vm577_vm7 = vcmask 7168  }
  0x3b   :  { %v588_v5 = vpack.c.bf16 %v73_v3, %v69_v2  ;;  %v72_v8 = vld [vmem:[#allocation5 + $0x20] sm:$0xff]  ;;  %v596_v9 = vpack.c.bf16 %v75_v6, %v71_v4  ;;  %v70_v11 = vld [vmem:[#allocation5 + $0x10] sm:$0xff]  ;;  %v77_v13 = vld [vmem:[#allocation5 + $0x48] sm:$0xff] }
  0x3c   :  { %v590_v10 = vpack.c.bf16 %v72_v8, %v68_v7  ;;  %v74_v12 = vld [vmem:[#allocation5 + $0x30] sm:$0xff]  ;;  %v81_v15 = vld [vmem:[#allocation5 + $0x68] sm:$0xff]  ;;  %v79_v16 = vld [vmem:[#allocation5 + $0x58] sm:$0xff] }
  0x3d   :  { %589 = vmatprep.subr.bf16.mxu0 %v588_v5  ;;  %v598_v14 = vpack.c.bf16 %v74_v12, %v70_v11  ;;  %v83_v17 = vld [vmem:[#allocation5 + $0x78] sm:$0xff]  ;;  %597 = vmatprep.subr.bf16.mxu1 %v596_v9  ;;  %v592_v18 = vpack.c.bf16 %v81_v15, %v77_v13  ;;  %v76_v20 = vld [vmem:[#allocation5 + $0x40] sm:$0xff]  ;;  %v78_v22 = vld [vmem:[#allocation5 + $0x50] sm:$0xff] }
  0x3e   :  { %591 = vmatpush1.bf16.msra.mxu0 %v590_v10  ;;  %v600_v19 = vpack.c.bf16 %v83_v17, %v79_v16  ;;  %v80_v21 = vld [vmem:[#allocation5 + $0x60] sm:$0xff]  ;;  %v82_v24 = vld [vmem:[#allocation5 + $0x70] sm:$0xff]  ;;  %v265_v25 = vld [vmem:[#allocation7 + $0x8] sm:$0xff] }
  0x3f   :  { %599 = vmatpush1.bf16.msra.mxu1 %v598_v14  ;;  %v594_v23 = vpack.c.bf16 %v80_v21, %v76_v20  ;;  %593 = vmatprep.subr.bf16.mxu0 %v592_v18  ;;  %v602_v26 = vpack.c.bf16 %v82_v24, %v78_v22  ;;  %v67_v27 = vld [vmem:[#allocation3] sm:$0xff]  ;;  %v329_v29 = vld [vmem:[#allocation7 + $0x208] sm:$0xff]  ;;  %v264_v33 = vld [vmem:[#allocation7] sm:$0xff] }
  0x40   :  { %601 = vmatprep.subr.bf16.mxu1 %v600_v19  ;;  %v267_v28 = vld [vmem:[#allocation7 + $0x18] sm:$0xff]  ;;  %v266_v34 = vld [vmem:[#allocation7 + $0x10] sm:$0xff]  ;;  %v328_v35 = vld [vmem:[#allocation7 + $0x200] sm:$0xff] }
  0x41   :  { %v331_v30 = vld [vmem:[#allocation7 + $0x218] sm:$0xff]  ;;  %v604_v31 = vpack.c.bf16 %v267_v28, %v265_v25  ;;  %v330_v36 = vld [vmem:[#allocation7 + $0x210] sm:$0xff]  ;;  %v269_v37 = vld [vmem:[#allocation7 + $0x28] sm:$0xff]  ;;  %v606_v39 = vpack.c.bf16 %v266_v34, %v264_v33 }
  0x42   :  { %v668_v32 = vpack.c.bf16 %v331_v30, %v329_v29  ;;  %595 = vmatpush1.bf16.msra.mxu0 %v594_v23  ;;  %v271_v38 = vld [vmem:[#allocation7 + $0x38] sm:$0xff]  ;;  %v670_v40 = vpack.c.bf16 %v330_v36, %v328_v35  ;;  %v333_v41 = vld [vmem:[#allocation7 + $0x228] sm:$0xff]  ;;  %v268_v43 = vld [vmem:[#allocation7 + $0x20] sm:$0xff] }
  0x43   :  { %603 = vmatpush1.bf16.msra.mxu1 %v602_v26  ;;  %v335_v42 = vld [vmem:[#allocation7 + $0x238] sm:$0xff]  ;;  %v608_v44 = vpack.c.bf16 %v271_v38, %v269_v37  ;;  %v270_v46 = vld [vmem:[#allocation7 + $0x30] sm:$0xff]  ;;  %v332_v47 = vld [vmem:[#allocation7 + $0x220] sm:$0xff] }
  0x44   :  { %669 = vmatprep.subr.bf16.mxu0 %v668_v32  ;;  %605 = vmatprep.subr.bf16.mxu1 %v604_v31  ;;  %v672_v45 = vpack.c.bf16 %v335_v42, %v333_v41  ;;  %v334_v48 = vld [vmem:[#allocation7 + $0x230] sm:$0xff]  ;;  %v273_v49 = vld [vmem:[#allocation7 + $0x48] sm:$0xff]  ;;  %v275_v50 = vld [vmem:[#allocation7 + $0x58] sm:$0xff]  ;;  %v610_v54 = vpack.c.bf16 %v270_v46, %v268_v43 }
  0x45   :  { %585 = vmatmul.mubr.msk.f32.vlgmr.msra.gmra.mrb[0].mxu0 %vm106_vm0, %v67_v27  ;;  %v337_v51 = vld [vmem:[#allocation7 + $0x248] sm:$0xff]  ;;  %v674_v52 = vpack.c.bf16 %v334_v48, %v332_v47  ;;  %v339_v53 = vld [vmem:[#allocation7 + $0x258] sm:$0xff]  ;;  %v272_v56 = vld [vmem:[#allocation7 + $0x40] sm:$0xff]  ;;  %v612_v59 = vpack.c.bf16 %v275_v50, %v273_v49 }
  0x46   :  { %586 = vmatmul.mubr.msk.f32.vlgmr.msra.gmra.mrb[0].mxu1 %vm106_vm0, %v67_v27  ;;  %671 = vmatpush1.bf16.msra.mxu0 %v670_v40  ;;  %v676_v55 = vpack.c.bf16 %v339_v53, %v337_v51  ;;  %v336_v57 = vld [vmem:[#allocation7 + $0x240] sm:$0xff]  ;;  %v338_v58 = vld [vmem:[#allocation7 + $0x250] sm:$0xff]  ;;  %v341_v61 = vld [vmem:[#allocation7 + $0x268] sm:$0xff] }
  0x47   :  { %607 = vmatpush1.bf16.msra.mxu1 %v606_v39  ;;  %673 = vmatprep.subr.bf16.mxu0 %v672_v45  ;;  %v274_v60 = vld [vmem:[#allocation7 + $0x50] sm:$0xff]  ;;  %v343_v62 = vld [vmem:[#allocation7 + $0x278] sm:$0xff]  ;;  %v277_v63 = vld [vmem:[#allocation7 + $0x68] sm:$0xff]  ;;  %v678_v1 = vpack.c.bf16 %v338_v58, %v336_v57 }
  0x48   :  { %609 = vmatprep.subr.bf16.mxu1 %v608_v44  ;;  %v279_v0 = vld [vmem:[#allocation7 + $0x78] sm:$0xff]  ;;  %v614_v2 = vpack.c.bf16 %v274_v60, %v272_v56  ;;  %v680_v3 = vpack.c.bf16 %v343_v62, %v341_v61  ;;  %v276_v4 = vld [vmem:[#allocation7 + $0x60] sm:$0xff]  ;;  %v342_v6 = vld [vmem:[#allocation7 + $0x270] sm:$0xff] }
  0x49   :  { %v340_v5 = vld [vmem:[#allocation7 + $0x260] sm:$0xff]  ;;  %v616_v7 = vpack.c.bf16 %v279_v0, %v277_v63  ;;  %v278_v8 = vld [vmem:[#allocation7 + $0x70] sm:$0xff]  ;;  %v345_v9 = vld [vmem:[#allocation7 + $0x288] sm:$0xff] }
  0x4a   :  { %675 = vmatpush1.bf16.msra.mxu0 %v674_v52  ;;  %v347_v10 = vld [vmem:[#allocation7 + $0x298] sm:$0xff]  ;;  %v281_v11 = vld [vmem:[#allocation7 + $0x88] sm:$0xff]  ;;  %v682_v13 = vpack.c.bf16 %v342_v6, %v340_v5  ;;  %v618_v14 = vpack.c.bf16 %v278_v8, %v276_v4  ;;  %v280_v16 = vld [vmem:[#allocation7 + $0x80] sm:$0xff] }
  0x4b   :  { %611 = vmatpush1.bf16.msra.mxu1 %v610_v54  ;;  %677 = vmatprep.subr.bf16.mxu0 %v676_v55  ;;  %v283_v12 = vld [vmem:[#allocation7 + $0x98] sm:$0xff]  ;;  %v684_v15 = vpack.c.bf16 %v347_v10, %v345_v9  ;;  %v344_v17 = vld [vmem:[#allocation7 + $0x280] sm:$0xff]  ;;  %v346_v18 = vld [vmem:[#allocation7 + $0x290] sm:$0xff] }
  0x4c   :  { %613 = vmatprep.subr.bf16.mxu1 %v612_v59  ;;  %v620_v19 = vpack.c.bf16 %v283_v12, %v281_v11  ;;  %v282_v20 = vld [vmem:[#allocation7 + $0x90] sm:$0xff]  ;;  %v349_v21 = vld [vmem:[#allocation7 + $0x2a8] sm:$0xff]  ;;  %v351_v22 = vld [vmem:[#allocation7 + $0x2b8] sm:$0xff]  ;;  %v686_v25 = vpack.c.bf16 %v346_v18, %v344_v17 }
  0x4d   :  { %v285_v23 = vld [vmem:[#allocation7 + $0xa8] sm:$0xff]  ;;  %v287_v24 = vld [vmem:[#allocation7 + $0xb8] sm:$0xff]  ;;  %v622_v26 = vpack.c.bf16 %v282_v20, %v280_v16  ;;  %v688_v27 = vpack.c.bf16 %v351_v22, %v349_v21  ;;  %v284_v28 = vld [vmem:[#allocation7 + $0xa0] sm:$0xff] }
  0x4e   :  { %679 = vmatpush1.bf16.msra.mxu0 %v678_v1  ;;  %v348_v29 = vld [vmem:[#allocation7 + $0x2a0] sm:$0xff]  ;;  %v350_v30 = vld [vmem:[#allocation7 + $0x2b0] sm:$0xff]  ;;  %v624_v31 = vpack.c.bf16 %v287_v24, %v285_v23  ;;  %v353_v33 = vld [vmem:[#allocation7 + $0x2c8] sm:$0xff] }
  0x4f   :  { %615 = vmatpush1.bf16.msra.mxu1 %v614_v2  ;;  %681 = vmatprep.subr.bf16.mxu0 %v680_v3  ;;  %v286_v32 = vld [vmem:[#allocation7 + $0xb0] sm:$0xff]  ;;  %v355_v34 = vld [vmem:[#allocation7 + $0x2d8] sm:$0xff]  ;;  %v289_v35 = vld [vmem:[#allocation7 + $0xc8] sm:$0xff]  ;;  %v690_v37 = vpack.c.bf16 %v350_v30, %v348_v29 }
  0x50   :  { %617 = vmatprep.subr.bf16.mxu1 %v616_v7  ;;  %v291_v36 = vld [vmem:[#allocation7 + $0xd8] sm:$0xff]  ;;  %v626_v38 = vpack.c.bf16 %v286_v32, %v284_v28  ;;  %v692_v39 = vpack.c.bf16 %v355_v34, %v353_v33  ;;  %v288_v40 = vld [vmem:[#allocation7 + $0xc0] sm:$0xff]  ;;  %v354_v42 = vld [vmem:[#allocation7 + $0x2d0] sm:$0xff] }
  0x51   :  { %v352_v41 = vld [vmem:[#allocation7 + $0x2c0] sm:$0xff]  ;;  %v628_v43 = vpack.c.bf16 %v291_v36, %v289_v35  ;;  %v290_v44 = vld [vmem:[#allocation7 + $0xd0] sm:$0xff]  ;;  %v357_v45 = vld [vmem:[#allocation7 + $0x2e8] sm:$0xff] }
  0x52   :  { %683 = vmatpush1.bf16.msra.mxu0 %v682_v13  ;;  %v359_v46 = vld [vmem:[#allocation7 + $0x2f8] sm:$0xff]  ;;  %v293_v47 = vld [vmem:[#allocation7 + $0xe8] sm:$0xff]  ;;  %v694_v49 = vpack.c.bf16 %v354_v42, %v352_v41  ;;  %v630_v50 = vpack.c.bf16 %v290_v44, %v288_v40  ;;  %v292_v52 = vld [vmem:[#allocation7 + $0xe0] sm:$0xff] }
  0x53   :  { %619 = vmatpush1.bf16.msra.mxu1 %v618_v14  ;;  %685 = vmatprep.subr.bf16.mxu0 %v684_v15  ;;  %v295_v48 = vld [vmem:[#allocation7 + $0xf8] sm:$0xff]  ;;  %v696_v51 = vpack.c.bf16 %v359_v46, %v357_v45  ;;  %v356_v53 = vld [vmem:[#allocation7 + $0x2e0] sm:$0xff]  ;;  %v358_v54 = vld [vmem:[#allocation7 + $0x2f0] sm:$0xff] }
  0x54   :  { %621 = vmatprep.subr.bf16.mxu1 %v620_v19  ;;  %v632_v55 = vpack.c.bf16 %v295_v48, %v293_v47  ;;  %v294_v56 = vld [vmem:[#allocation7 + $0xf0] sm:$0xff]  ;;  %v361_v57 = vld [vmem:[#allocation7 + $0x308] sm:$0xff]  ;;  %v363_v58 = vld [vmem:[#allocation7 + $0x318] sm:$0xff]  ;;  %v698_v61 = vpack.c.bf16 %v358_v54, %v356_v53 }
  0x55   :  { %v297_v59 = vld [vmem:[#allocation7 + $0x108] sm:$0xff]  ;;  %v299_v60 = vld [vmem:[#allocation7 + $0x118] sm:$0xff]  ;;  %v634_v62 = vpack.c.bf16 %v294_v56, %v292_v52  ;;  %v700_v63 = vpack.c.bf16 %v363_v58, %v361_v57  ;;  %v296_v0 = vld [vmem:[#allocation7 + $0x100] sm:$0xff] }
  0x56   :  { %687 = vmatpush1.bf16.msra.mxu0 %v686_v25  ;;  %v360_v1 = vld [vmem:[#allocation7 + $0x300] sm:$0xff]  ;;  %v362_v2 = vld [vmem:[#allocation7 + $0x310] sm:$0xff]  ;;  %v636_v3 = vpack.c.bf16 %v299_v60, %v297_v59  ;;  %v365_v5 = vld [vmem:[#allocation7 + $0x328] sm:$0xff] }
  0x57   :  { %623 = vmatpush1.bf16.msra.mxu1 %v622_v26  ;;  %689 = vmatprep.subr.bf16.mxu0 %v688_v27  ;;  %v298_v4 = vld [vmem:[#allocation7 + $0x110] sm:$0xff]  ;;  %v367_v6 = vld [vmem:[#allocation7 + $0x338] sm:$0xff]  ;;  %v301_v7 = vld [vmem:[#allocation7 + $0x128] sm:$0xff]  ;;  %v702_v9 = vpack.c.bf16 %v362_v2, %v360_v1 }
  0x58   :  { %625 = vmatprep.subr.bf16.mxu1 %v624_v31  ;;  %v303_v8 = vld [vmem:[#allocation7 + $0x138] sm:$0xff]  ;;  %v638_v10 = vpack.c.bf16 %v298_v4, %v296_v0  ;;  %v704_v11 = vpack.c.bf16 %v367_v6, %v365_v5  ;;  %v300_v12 = vld [vmem:[#allocation7 + $0x120] sm:$0xff]  ;;  %v366_v14 = vld [vmem:[#allocation7 + $0x330] sm:$0xff] }
  0x59   :  { %v364_v13 = vld [vmem:[#allocation7 + $0x320] sm:$0xff]  ;;  %v640_v15 = vpack.c.bf16 %v303_v8, %v301_v7  ;;  %v302_v16 = vld [vmem:[#allocation7 + $0x130] sm:$0xff]  ;;  %v369_v17 = vld [vmem:[#allocation7 + $0x348] sm:$0xff] }
  0x5a   :  { %691 = vmatpush1.bf16.msra.mxu0 %v690_v37  ;;  %v371_v18 = vld [vmem:[#allocation7 + $0x358] sm:$0xff]  ;;  %v305_v19 = vld [vmem:[#allocation7 + $0x148] sm:$0xff]  ;;  %v706_v21 = vpack.c.bf16 %v366_v14, %v364_v13  ;;  %v642_v22 = vpack.c.bf16 %v302_v16, %v300_v12  ;;  %v304_v24 = vld [vmem:[#allocation7 + $0x140] sm:$0xff] }
  0x5b   :  { %627 = vmatpush1.bf16.msra.mxu1 %v626_v38  ;;  %693 = vmatprep.subr.bf16.mxu0 %v692_v39  ;;  %v307_v20 = vld [vmem:[#allocation7 + $0x158] sm:$0xff]  ;;  %v708_v23 = vpack.c.bf16 %v371_v18, %v369_v17  ;;  %v368_v25 = vld [vmem:[#allocation7 + $0x340] sm:$0xff]  ;;  %v370_v26 = vld [vmem:[#allocation7 + $0x350] sm:$0xff] }
  0x5c   :  { %629 = vmatprep.subr.bf16.mxu1 %v628_v43  ;;  %v644_v27 = vpack.c.bf16 %v307_v20, %v305_v19  ;;  %v306_v28 = vld [vmem:[#allocation7 + $0x150] sm:$0xff]  ;;  %v373_v29 = vld [vmem:[#allocation7 + $0x368] sm:$0xff]  ;;  %v375_v30 = vld [vmem:[#allocation7 + $0x378] sm:$0xff]  ;;  %v710_v33 = vpack.c.bf16 %v370_v26, %v368_v25 }
  0x5d   :  { %v309_v31 = vld [vmem:[#allocation7 + $0x168] sm:$0xff]  ;;  %v311_v32 = vld [vmem:[#allocation7 + $0x178] sm:$0xff]  ;;  %v646_v34 = vpack.c.bf16 %v306_v28, %v304_v24  ;;  %v712_v35 = vpack.c.bf16 %v375_v30, %v373_v29  ;;  %v308_v36 = vld [vmem:[#allocation7 + $0x160] sm:$0xff] }
  0x5e   :  { %695 = vmatpush1.bf16.msra.mxu0 %v694_v49  ;;  %v372_v37 = vld [vmem:[#allocation7 + $0x360] sm:$0xff]  ;;  %v374_v38 = vld [vmem:[#allocation7 + $0x370] sm:$0xff]  ;;  %v648_v39 = vpack.c.bf16 %v311_v32, %v309_v31  ;;  %v377_v41 = vld [vmem:[#allocation7 + $0x388] sm:$0xff] }
  0x5f   :  { %631 = vmatpush1.bf16.msra.mxu1 %v630_v50  ;;  %697 = vmatprep.subr.bf16.mxu0 %v696_v51  ;;  %v310_v40 = vld [vmem:[#allocation7 + $0x170] sm:$0xff]  ;;  %v379_v42 = vld [vmem:[#allocation7 + $0x398] sm:$0xff]  ;;  %v313_v43 = vld [vmem:[#allocation7 + $0x188] sm:$0xff]  ;;  %v714_v45 = vpack.c.bf16 %v374_v38, %v372_v37 }
  0x60   :  { %633 = vmatprep.subr.bf16.mxu1 %v632_v55  ;;  %v315_v44 = vld [vmem:[#allocation7 + $0x198] sm:$0xff]  ;;  %v650_v46 = vpack.c.bf16 %v310_v40, %v308_v36  ;;  %v716_v47 = vpack.c.bf16 %v379_v42, %v377_v41  ;;  %v312_v48 = vld [vmem:[#allocation7 + $0x180] sm:$0xff]  ;;  %v378_v50 = vld [vmem:[#allocation7 + $0x390] sm:$0xff] }
  0x61   :  { %v376_v49 = vld [vmem:[#allocation7 + $0x380] sm:$0xff]  ;;  %v652_v51 = vpack.c.bf16 %v315_v44, %v313_v43  ;;  %v314_v52 = vld [vmem:[#allocation7 + $0x190] sm:$0xff]  ;;  %v381_v53 = vld [vmem:[#allocation7 + $0x3a8] sm:$0xff] }
  0x62   :  { %699 = vmatpush1.bf16.msra.mxu0 %v698_v61  ;;  %v383_v54 = vld [vmem:[#allocation7 + $0x3b8] sm:$0xff]  ;;  %v317_v55 = vld [vmem:[#allocation7 + $0x1a8] sm:$0xff]  ;;  %v718_v57 = vpack.c.bf16 %v378_v50, %v376_v49  ;;  %v654_v58 = vpack.c.bf16 %v314_v52, %v312_v48  ;;  %v380_v60 = vld [vmem:[#allocation7 + $0x3a0] sm:$0xff] }
  0x63   :  { %635 = vmatpush1.bf16.msra.mxu1 %v634_v62  ;;  %701 = vmatprep.subr.bf16.mxu0 %v700_v63  ;;  %v319_v56 = vld [vmem:[#allocation7 + $0x1b8] sm:$0xff]  ;;  %v720_v59 = vpack.c.bf16 %v383_v54, %v381_v53  ;;  %v382_v61 = vld [vmem:[#allocation7 + $0x3b0] sm:$0xff]  ;;  %v316_v63 = vld [vmem:[#allocation7 + $0x1a0] sm:$0xff] }
  0x64   :  { %637 = vmatprep.subr.bf16.mxu1 %v636_v3  ;;  %v656_v62 = vpack.c.bf16 %v319_v56, %v317_v55  ;;  %v318_v0 = vld [vmem:[#allocation7 + $0x1b0] sm:$0xff]  ;;  %v722_v1 = vpack.c.bf16 %v382_v61, %v380_v60  ;;  %v321_v3 = vld [vmem:[#allocation7 + $0x1c8] sm:$0xff]  ;;  %v323_v4 = vld [vmem:[#allocation7 + $0x1d8] sm:$0xff] }
  0x65   :  { %v658_v2 = vpack.c.bf16 %v318_v0, %v316_v63  ;;  %v385_v5 = vld [vmem:[#allocation7 + $0x3c8] sm:$0xff]  ;;  %v660_v6 = vpack.c.bf16 %v323_v4, %v321_v3  ;;  %v387_v7 = vld [vmem:[#allocation7 + $0x3d8] sm:$0xff]  ;;  %v320_v8 = vld [vmem:[#allocation7 + $0x1c0] sm:$0xff] }
  0x66   :  { %703 = vmatpush1.bf16.msra.mxu0 %v702_v9  ;;  %v322_v9 = vld [vmem:[#allocation7 + $0x1d0] sm:$0xff]  ;;  %v384_v12 = vld [vmem:[#allocation7 + $0x3c0] sm:$0xff]  ;;  %v327_v16 = vld [vmem:[#allocation7 + $0x1f8] sm:$0xff] }
  0x67   :  { %639 = vmatpush1.bf16.msra.mxu1 %v638_v10  ;;  %705 = vmatprep.subr.bf16.mxu0 %v704_v11  ;;  %v724_v10 = vpack.c.bf16 %v387_v7, %v385_v5  ;;  %v662_v11 = vpack.c.bf16 %v322_v9, %v320_v8  ;;  %v386_v13 = vld [vmem:[#allocation7 + $0x3d0] sm:$0xff]  ;;  %v389_v17 = vld [vmem:[#allocation7 + $0x3e8] sm:$0xff]  ;;  %v391_v19 = vld [vmem:[#allocation7 + $0x3f8] sm:$0xff] }
  0x68   :  { %641 = vmatprep.subr.bf16.mxu1 %v640_v15  ;;  %v726_v14 = vpack.c.bf16 %v386_v13, %v384_v12  ;;  %v325_v15 = vld [vmem:[#allocation7 + $0x1e8] sm:$0xff]  ;;  %v324_v20 = vld [vmem:[#allocation7 + $0x1e0] sm:$0xff]  ;;  %v390_v25 = vld [vmem:[#allocation7 + $0x3f0] sm:$0xff] }
  0x69   :  { %v664_v18 = vpack.c.bf16 %v327_v16, %v325_v15  ;;  %v388_v24 = vld [vmem:[#allocation7 + $0x3e0] sm:$0xff]  ;;  %v84_v30 = vld [vmem:[%s917_s2] sm:$0xf] }
  0x6a   :  { %707 = vmatpush1.bf16.msra.mxu0 %v706_v21  ;;  %v326_v21 = vld [vmem:[#allocation7 + $0x1f0] sm:$0xff]  ;;  %v730_v26 = vpack.c.bf16 %v390_v25, %v388_v24 }
  0x6b   :  { %643 = vmatpush1.bf16.msra.mxu1 %v642_v22  ;;  %709 = vmatprep.subr.bf16.mxu0 %v708_v23  ;;  %v728_v22 = vpack.c.bf16 %v391_v19, %v389_v17  ;;  %v666_v23 = vpack.c.bf16 %v326_v21, %v324_v20  ;;  %v392_v54 = vld [vmem:[%s919_s4] sm:$0x3] }
  0x6c   :  { %645 = vmatprep.subr.bf16.mxu1 %v644_v27  ;;  %v86_v27 = vlaneseq  ;;  %v552_v61 = vld [vmem:[%s920_s5] sm:$0x3] }
  0x6e   :  { %711 = vmatpush1.bf16.msra.mxu0 %v710_v33  ;;  %v87_v28 = vshrl.u32 %v86_v27, 7 }
  0x6f   :  { %647 = vmatpush1.bf16.msra.mxu1 %v646_v34  ;;  %713 = vmatprep.subr.bf16.mxu0 %v712_v35 }
  0x70   :  { %649 = vmatprep.subr.bf16.mxu1 %v648_v39  ;;  %v88_v29 = vsub.s32 0, %v87_v28  ;;  %v96_v31 = vsub.s32 2, %v87_v28  ;;  %v92_v32 = vsub.s32 1, %v87_v28  ;;  %v100_v33 = vsub.s32 3, %v87_v28 }
  0x72   :  { %715 = vmatpush1.bf16.msra.mxu0 %v714_v45  ;;  %v89_v34 = vrot.slane %v84_v30, %v88_v29  ;;  %v97_v35 = vrot.slane %v84_v30, %v96_v31  ;;  %v93_v36 = vrot.slane %v84_v30, %v92_v32  ;;  %v101_v37 = vrot.slane %v84_v30, %v100_v33 }
  0x73   :  { %651 = vmatpush1.bf16.msra.mxu1 %v650_v46  ;;  %717 = vmatprep.subr.bf16.mxu0 %v716_v47  ;;  %v397_v55 = vrot.slane %v392_v54, %v88_v29  ;;  %v401_v56 = vrot.slane %v392_v54, %v92_v32  ;;  %v561_v4 = vrot.slane %v552_v61, %v92_v32 }
  0x74   :  { %653 = vmatprep.subr.bf16.mxu1 %v652_v51 }
  0x76   :  { %719 = vmatpush1.bf16.msra.mxu0 %v718_v57 }
  0x77   :  { %655 = vmatpush1.bf16.msra.mxu1 %v654_v58  ;;  %721 = vmatprep.subr.bf16.mxu0 %v720_v59 }
  0x78   :  { %657 = vmatprep.subr.bf16.mxu1 %v656_v62 }
  0x7a   :  { %723 = vmatpush1.bf16.msra.mxu0 %v722_v1 }
  0x7b   :  { %659 = vmatpush1.bf16.msra.mxu1 %v658_v2  ;;  %725 = vmatprep.subr.bf16.mxu0 %v724_v10  ;;  %v557_v2 = vrot.slane %v552_v61, %v88_v29 }
  0x7c   :  { %661 = vmatprep.subr.bf16.mxu1 %v660_v6 }
  0x7e   :  { %727 = vmatpush1.bf16.msra.mxu0 %v726_v14 }
  0x7f   :  { %663 = vmatpush1.bf16.msra.mxu1 %v662_v11  ;;  %729 = vmatprep.subr.bf16.mxu0 %v728_v22  ;;  %v587_v11 = vld [vmem:[#allocation2] ss:$0 sm:$0xff] }
  0x80   :  { %665 = vmatprep.subr.bf16.mxu1 %v664_v18 }
  0x82   :  { %731 = vmatpush1.bf16.msra.mxu0 %v730_v26 }
  0x83   :  { %667 = vmatpush1.bf16.msra.mxu1 %v666_v23 }
 0x118   :  { %v176_v38 = vpop.f32.mrb[0].mxu0 }
 0x119   :  { %v177_v39 = vadd.f32 %v176_v38, %v89_v34  ;;  %v247_v40 = vpop.f32.mrb[0].mxu1  ;;  %v178_v41 = vpop.f32.mrb[1].mxu0 }
 0x11a   :  { %v248_v42 = vadd.f32 %v247_v40, %v97_v35  ;;  %v179_v43 = vadd.f32 %v178_v41, %v93_v36  ;;  %v249_v44 = vpop.f32.mrb[1].mxu1 }
 0x11b   :  { %v256_v45 = vmul.f32 0.2, %v177_v39  ;;  %v250_v46 = vadd.f32 %v249_v44, %v101_v37  ;;  %vm252_vm1 = vcmp.gt.f32.partialorder %v177_v39, 0.0 }
 0x11c   :  { %v258_v47 = vmul.f32 0.2, %v248_v42  ;;  %v257_v48 = vmul.f32 0.2, %v179_v43  ;;  %vm253_vm2 = vcmp.gt.f32.partialorder %v179_v43, 0.0  ;;  %vm254_vm3 = vcmp.gt.f32.partialorder %v248_v42, 0.0 }
 0x11d   :  { %v259_v49 = vmul.f32 0.2, %v250_v46  ;;  %vm255_vm4 = vcmp.gt.f32.partialorder %v250_v46, 0.0  ;;  %v260_v52 = vsel %vm252_vm1, %v177_v39, %v256_v45 }
 0x11e   :  { %v261_v50 = vsel %vm253_vm2, %v179_v43, %v257_v48  ;;  %v262_v53 = vsel %vm254_vm3, %v248_v42, %v258_v47 }
 0x11f   :  { %468 = vmatprep.mubr.f32.mxu1 %v261_v50  ;;  %v263_v51 = vsel %vm255_vm4, %v250_v46, %v259_v49 }
 0x120   :  { %539 = vmatprep.mubr.f32.mxu0 %v263_v51  ;;  %469 = vmatmul.mubr.f32.vlgmr.msra.gmra.mrb[2].mxu1 %v260_v52 }
 0x121   :  { %540 = vmatmul.mubr.f32.vlgmr.msra.gmra.mrb[2].mxu0 %v262_v53 }
 0x1f3   :  { %v470_v57 = vpop.f32.mrb[2].mxu1 }
 0x1f4   :  { %v471_v58 = vadd.f32 %v470_v57, %v397_v55  ;;  %v541_v59 = vpop.f32.mrb[2].mxu0  ;;  %v472_v60 = vpop.f32.mrb[3].mxu1 }
 0x1f5   :  { %v473_v62 = vadd.f32 %v472_v60, %v401_v56  ;;  %v543_v63 = vpop.f32.mrb[3].mxu0 }
 0x1f6   :  { %v542_v0 = vadd.f32 %v541_v59, %v471_v58 }
 0x1f7   :  { %v544_v1 = vadd.f32 %v543_v63, %v473_v62 }
 0x1f8   :  { %vm546_vm5 = vcmp.gt.f32.partialorder %v542_v0, 0.0  ;;  %v548_v3 = vmul.f32 0.2, %v542_v0 }
 0x1f9   :  { %vm547_vm6 = vcmp.gt.f32.partialorder %v544_v1, 0.0  ;;  %v549_v5 = vmul.f32 0.2, %v544_v1 }
 0x1fa   :  { %v550_v6 = vsel %vm546_vm5, %v542_v0, %v548_v3 }
 0x1fb   :  { %v551_v7 = vsel %vm547_vm6, %v544_v1, %v549_v5  ;;  %v564_v8 = vmul.f32 %v557_v2, %v550_v6 }
 0x1fc   :  { %v565_v9 = vmul.f32 %v561_v4, %v551_v7 }
 0x1fe   :  { %v566_v10 = vadd.f32 %v565_v9, %v564_v8 }
 0x200   :  { %567 = vadd.xlane.f32.xlu0 %v566_v10 }
 0x28d   :  { %v568_v12 = vpop.xlane.xlu0 %567 }
 0x28e   :  { %v576_v13 = vadd.f32 %v587_v11, %v568_v12 }
 0x290   :  { %578 = vst.msk [vmem:[%s922_s7] sm:$0xff] %vm577_vm7, %v576_v13 }
 0x291   :  { %583 = vsyncpa [#allocation4], 1 }
 0x292   :  { %584 = vsyncpa [#allocation6], 1 }

</bundles_post_ra>
